<compile_context>
chip_gen: v7x
topology: tpu7x:2x2x1
jax: 0.10.0
libtpu: 0.0.40
codegen_flags: <defaults>
</compile_context>

<pallas_src>
import math

import jax
import jax.numpy as jnp
from jax.experimental import pallas as pl
from jax.experimental.pallas import tpu as pltpu


def _pick_tile(HW):
    # Output-pixel tile: multiple of 128 for unmasked lane-dense stores; fall back to the
    # full extent when HW is not a multiple of 128 (full-dim blocks are always legal).
    for tn in (512, 256, 128):
        if HW % tn == 0:
            return tn
    return HW


def _make_kernel(C, H, W, HW, TN, cx, cy):
    def kernel(trig_ref, flag_ref, coords_ref, x_ref, o_ref):
        b = pl.program_id(0)
        j = pl.program_id(1)
        applied = flag_ref[b] != 0

        @pl.when(jnp.logical_not(applied))
        def _passthrough():
            # kornia leaves unselected samples untouched: exact copy, no warp work at all.
            col0 = pl.multiple_of(j * TN, TN)
            o_ref[0] = x_ref[0, :, pl.ds(col0, TN)]

        @pl.when(applied)
        def _rotate():
            cos_a = trig_ref[2 * b]
            sin_a = trig_ref[2 * b + 1]

            # Angle-independent center offsets precomputed once in the wrapper.
            dx = coords_ref[0:1, :]  # (1, TN)  = ox - cx
            dy = coords_ref[1:2, :]  # (1, TN)  = oy - cy

            # dst->src map: kornia get_rotation_matrix2d builds the forward matrix
            # [[c, s], [-s, c]] about the center and warp_affine inverts it, so the
            # sampling map is [[c, -s], [s, c]] (direct pixel coords, align_corners=True).
            sx = cos_a * dx - sin_a * dy + cx
            sy = sin_a * dx + cos_a * dy + cy

            x0f = jnp.floor(sx)
            y0f = jnp.floor(sy)
            ax = sx - x0f
            ay = sy - y0f
            x0 = x0f.astype(jnp.int32)
            y0 = y0f.astype(jnp.int32)
            x1 = x0 + 1
            y1 = y0 + 1

            # Bilinear tap weights with zeros padding folded in (invalid tap -> weight 0).
            wx0 = jnp.where((x0 >= 0) & (x0 < W), 1.0 - ax, 0.0)
            wx1 = jnp.where((x1 >= 0) & (x1 < W), ax, 0.0)
            wy0 = jnp.where((y0 >= 0) & (y0 < H), 1.0 - ay, 0.0)
            wy1 = jnp.where((y1 >= 0) & (y1 < H), ay, 0.0)

            # Separable one-hot interpolation weights, O((H+W)*TN) compares total.
            # (A pltpu.roll of eq_x0 to get eq_x1 would drop the valid x1==0 tap when
            #  x0 == -1 at the image border, so the second compare is kept.)
            ix = jax.lax.broadcasted_iota(jnp.int32, (W, TN), 0)
            iy = jax.lax.broadcasted_iota(jnp.int32, (H, TN), 0)
            gx = jnp.where(ix == x0, wx0, 0.0) + jnp.where(ix == x1, wx1, 0.0)
            gy = jnp.where(iy == y0, wy0, 0.0) + jnp.where(iy == y1, wy1, 0.0)

            # bf16 warp block: halves VMEM/vreg pressure and feeds the native bf16 MXU;
            # f32 accumulation. Small (~1e-2 rel) precision loss in the bilinear weights.
            gx = gx.astype(jnp.bfloat16)
            gy = gy.astype(jnp.bfloat16)

            # Dense (HW, TN) warp block via a single outer-product multiply per element:
            #   wt[iy*W + ix, t] = gy[iy, t] * gx[ix, t]
            wt = (gy[:, None, :] * gx[None, :, :]).reshape(HW, TN)

            img = x_ref[0].astype(jnp.bfloat16)  # (C, HW)
            out = jnp.dot(img, wt, preferred_element_type=jnp.float32)  # (C, TN) on MXU
            o_ref[0] = out.astype(o_ref.dtype)

    return kernel


def data_augmentation(batch_images, key, p_rotation=0.5):
    """JAX/Pallas equivalent of DataAugmentation.forward (NCHW in, NCHW out)."""
    B, C, H, W = batch_images.shape
    HW = H * W
    cx = (W - 1) / 2.0
    cy = (H - 1) / 2.0

    # Per-sample random parameters (kornia RandomRotation: Bernoulli(p) gate,
    # angle ~ U(-180, 180) deg).
    k_apply, k_angle = jax.random.split(key)
    apply = jax.random.bernoulli(k_apply, p_rotation, (B,))
    degs = jax.random.uniform(k_angle, (B,), minval=-180.0, maxval=180.0)
    ang = jnp.where(apply, degs, 0.0) * (math.pi / 180.0)
    # Flat 1D SMEM scalars: interleaved [cos0, sin0, cos1, sin1, ...] (no 2D SMEM padding).
    trig = jnp.stack([jnp.cos(ang), jnp.sin(ang)], axis=-1).reshape(-1).astype(jnp.float32)
    flags = apply.astype(jnp.int32)  # (B,)

    # Angle-independent per-pixel center offsets, computed once outside the grid loop.
    xs = jnp.arange(W, dtype=jnp.float32) - cx
    ys = jnp.arange(H, dtype=jnp.float32) - cy
    coords = jnp.stack([jnp.tile(xs, H), jnp.repeat(ys, W)], axis=0)  # (2, HW): dx, dy

    TN = _pick_tile(HW)
    x_flat = batch_images.reshape(B, C, HW)  # no dtype round trip; kernel handles input dtype

    kernel = _make_kernel(C, H, W, HW, TN, cx, cy)
    out_flat = pl.pallas_call(
        kernel,
        out_shape=jax.ShapeDtypeStruct((B, C, HW), batch_images.dtype),
        grid=(B, HW // TN),
        in_specs=[
            pl.BlockSpec(memory_space=pltpu.MemorySpace.SMEM),    # trig  (2B,) scalars
            pl.BlockSpec(memory_space=pltpu.MemorySpace.SMEM),    # flags (B,)  scalars
            pl.BlockSpec((2, TN), lambda b, j: (0, j)),           # dx/dy tile (lane-dense)
            pl.BlockSpec((1, C, HW), lambda b, j: (b, 0, 0)),     # full image (reused across j)
        ],
        out_specs=pl.BlockSpec((1, C, TN), lambda b, j: (b, 0, j)),  # lane-dense output tile
        compiler_params=pltpu.CompilerParams(
            dimension_semantics=("parallel", "parallel"),
            vmem_limit_bytes=32 * 1024 * 1024,  # above v5e's 16 MiB scoped default
        ),
    )(trig, flags, coords, x_flat)

    return out_flat.reshape(B, C, H, W)


if __name__ == "__main__":
    key = jax.random.PRNGKey(0)
    k_img, k_aug = jax.random.split(key)

    # Small NCHW batch: B=2, C=4, H=W=16.
    x = jax.random.uniform(k_img, (2, 4, 16, 16), dtype=jnp.float32)

    # p=0.5: mixture of rotated / passthrough samples (module default).
    out = jax.block_until_ready(data_augmentation(x, k_aug, p_rotation=0.5))
    assert out.shape == x.shape, (out.shape, x.shape)
    assert out.dtype == x.dtype
    assert bool(jnp.all(jnp.isfinite(out)))

    # p=0: no sample is transformed -> exact (bit-identical) passthrough via the copy path.
    out_id = jax.block_until_ready(data_augmentation(x, k_aug, p_rotation=0.0))
    assert bool(jnp.array_equal(out_id, x))

    # p=1: every sample is rotated (warp path). Bilinear warp with zeros padding is a convex
    # combination of in-range pixels, so values stay within [0, max(x)] up to bf16 rounding.
    out_rot = jax.block_until_ready(data_augmentation(x, jax.random.PRNGKey(1), p_rotation=1.0))
    assert bool(jnp.all(jnp.isfinite(out_rot)))
    assert float(out_rot.max()) <= float(x.max()) * 1.05 + 1e-6
    assert float(out_rot.min()) >= -1e-2

    print("KERNEL_OK")
</pallas_src>

<mosaic_0001>
module attributes {stable_mosaic.version = 11 : i64} {
  func.func @kernel(%arg0: i32, %arg1: i32, %arg2: memref<4xf32, #tpu.memory_space<smem>>, %arg3: memref<2xi32, #tpu.memory_space<smem>>, %arg4: memref<2x256xf32, #tpu.memory_space<vmem>>, %arg5: memref<1x4x256xf32, #tpu.memory_space<vmem>>, %arg6: memref<1x4x256xf32, #tpu.memory_space<vmem>>) attributes {dimension_semantics = [#tpu.dimension_semantics<parallel>, #tpu.dimension_semantics<parallel>], iteration_bounds = array<i64: 2, 1>, scalar_prefetch = 0 : i64, scratch_operands = 0 : i64, tpu.core_type = #tpu.core_type<tc>, window_params = [{transform_indices = @transform_0, window_bounds = array<i64: 4>}, {transform_indices = @transform_1, window_bounds = array<i64: 2>}, {transform_indices = @transform_2, window_bounds = array<i64: 2, 256>}, {transform_indices = @transform_3, window_bounds = array<i64: 1, 4, 256>}, {transform_indices = @transform_4, window_bounds = array<i64: 1, 4, 256>}]} {
    %0 = arith.index_cast %arg0 : i32 to index
    %1 = memref.load %arg3[%0] : memref<2xi32, #tpu.memory_space<smem>>
    %c0_i32 = arith.constant 0 : i32
    %2 = arith.cmpi ne, %1, %c0_i32 : i32
    %true = arith.constant true
    %3 = arith.xori %2, %true : i1
    %4 = arith.extui %3 : i1 to i32
    %c0_i32_0 = arith.constant 0 : i32
    %5 = arith.cmpi ne, %4, %c0_i32_0 : i32
    scf.if %5 {
      %c256_i32 = arith.constant 256 : i32
      %8 = arith.muli %arg1, %c256_i32 : i32
      %9 = tpu.assume_multiple %8, 256 : i32
      %c0 = arith.constant 0 : index
      %c0_2 = arith.constant 0 : index
      %10 = arith.index_cast %9 : i32 to index
      %11 = vector.load %arg5[%c0, %c0_2, %10] : memref<1x4x256xf32, #tpu.memory_space<vmem>>, vector<1x4x256xf32>
      %12 = vector.shape_cast %11 : vector<1x4x256xf32> to vector<4x256xf32>
      %c0_3 = arith.constant 0 : index
      %c0_4 = arith.constant 0 : index
      %c0_5 = arith.constant 0 : index
      %13 = vector.load %arg6[%c0_3, %c0_4, %c0_5] : memref<1x4x256xf32, #tpu.memory_space<vmem>>, vector<1x4x256xf32>
      %14 = vector.shape_cast %13 : vector<1x4x256xf32> to vector<4x256xf32>
      %15 = vector.shape_cast %12 : vector<4x256xf32> to vector<1x4x256xf32>
      tpu.vector_store %arg6[%c0_3, %c0_4, %c0_5], %15 {strides = array<i32>} : memref<1x4x256xf32, #tpu.memory_space<vmem>>, vector<1x4x256xf32>,
    } else {
    }
    %6 = arith.extui %2 : i1 to i32
    %c0_i32_1 = arith.constant 0 : i32
    %7 = arith.cmpi ne, %6, %c0_i32_1 : i32
    scf.if %7 {
      %c2_i32 = arith.constant 2 : i32
      %8 = arith.muli %c2_i32, %arg0 : i32
      %9 = arith.index_cast %8 : i32 to index
      %10 = memref.load %arg2[%9] : memref<4xf32, #tpu.memory_space<smem>>
      %c2_i32_2 = arith.constant 2 : i32
      %11 = arith.muli %c2_i32_2, %arg0 : i32
      %c1_i32 = arith.constant 1 : i32
      %12 = arith.addi %11, %c1_i32 : i32
      %13 = arith.index_cast %12 : i32 to index
      %14 = memref.load %arg2[%13] : memref<4xf32, #tpu.memory_space<smem>>
      %c0 = arith.constant 0 : index
      %c0_3 = arith.constant 0 : index
      %15 = vector.load %arg4[%c0, %c0_3] : memref<2x256xf32, #tpu.memory_space<vmem>>, vector<1x256xf32>
      %c1 = arith.constant 1 : index
      %c0_4 = arith.constant 0 : index
      %16 = vector.load %arg4[%c1, %c0_4] : memref<2x256xf32, #tpu.memory_space<vmem>>, vector<1x256xf32>
      %17 = vector.broadcast %10 : f32 to vector<1x256xf32>
      %18 = arith.mulf %17, %15 : vector<1x256xf32>
      %19 = vector.broadcast %14 : f32 to vector<1x256xf32>
      %20 = arith.mulf %19, %16 : vector<1x256xf32>
      %21 = arith.subf %18, %20 : vector<1x256xf32>
      %cst = arith.constant 7.500000e+00 : f32
      %22 = vector.broadcast %cst : f32 to vector<1x256xf32>
      %23 = arith.addf %21, %22 : vector<1x256xf32>
      %24 = vector.broadcast %14 : f32 to vector<1x256xf32>
      %25 = arith.mulf %24, %15 : vector<1x256xf32>
      %26 = vector.broadcast %10 : f32 to vector<1x256xf32>
      %27 = arith.mulf %26, %16 : vector<1x256xf32>
      %28 = arith.addf %25, %27 : vector<1x256xf32>
      %cst_5 = arith.constant 7.500000e+00 : f32
      %29 = vector.broadcast %cst_5 : f32 to vector<1x256xf32>
      %30 = arith.addf %28, %29 : vector<1x256xf32>
      %31 = math.floor %23 : vector<1x256xf32>
      %32 = math.floor %30 : vector<1x256xf32>
      %33 = arith.subf %23, %31 : vector<1x256xf32>
      %34 = arith.subf %30, %32 : vector<1x256xf32>
      %35 = arith.fptosi %31 : vector<1x256xf32> to vector<1x256xi32>
      %36 = arith.fptosi %32 : vector<1x256xf32> to vector<1x256xi32>
      %c1_i32_6 = arith.constant 1 : i32
      %37 = vector.broadcast %c1_i32_6 : i32 to vector<1x256xi32>
      %38 = arith.addi %35, %37 : vector<1x256xi32>
      %c1_i32_7 = arith.constant 1 : i32
      %39 = vector.broadcast %c1_i32_7 : i32 to vector<1x256xi32>
      %40 = arith.addi %36, %39 : vector<1x256xi32>
      %c0_i32_8 = arith.constant 0 : i32
      %41 = vector.broadcast %c0_i32_8 : i32 to vector<1x256xi32>
      %42 = arith.cmpi sge, %35, %41 : vector<1x256xi32>
      %c16_i32 = arith.constant 16 : i32
      %43 = vector.broadcast %c16_i32 : i32 to vector<1x256xi32>
      %44 = arith.cmpi slt, %35, %43 : vector<1x256xi32>
      %45 = arith.andi %42, %44 : vector<1x256xi1>
      %cst_9 = arith.constant 1.000000e+00 : f32
      %46 = vector.broadcast %cst_9 : f32 to vector<1x256xf32>
      %47 = arith.subf %46, %33 : vector<1x256xf32>
      %cst_10 = arith.constant 0.000000e+00 : f32
      %48 = vector.broadcast %cst_10 : f32 to vector<1x256xf32>
      %49 = arith.select %45, %47, %48 : vector<1x256xi1>, vector<1x256xf32>
      %c0_i32_11 = arith.constant 0 : i32
      %50 = vector.broadcast %c0_i32_11 : i32 to vector<1x256xi32>
      %51 = arith.cmpi sge, %38, %50 : vector<1x256xi32>
      %c16_i32_12 = arith.constant 16 : i32
      %52 = vector.broadcast %c16_i32_12 : i32 to vector<1x256xi32>
      %53 = arith.cmpi slt, %38, %52 : vector<1x256xi32>
      %54 = arith.andi %51, %53 : vector<1x256xi1>
      %cst_13 = arith.constant 0.000000e+00 : f32
      %55 = vector.broadcast %cst_13 : f32 to vector<1x256xf32>
      %56 = arith.select %54, %33, %55 : vector<1x256xi1>, vector<1x256xf32>
      %c0_i32_14 = arith.constant 0 : i32
      %57 = vector.broadcast %c0_i32_14 : i32 to vector<1x256xi32>
      %58 = arith.cmpi sge, %36, %57 : vector<1x256xi32>
      %c16_i32_15 = arith.constant 16 : i32
      %59 = vector.broadcast %c16_i32_15 : i32 to vector<1x256xi32>
      %60 = arith.cmpi slt, %36, %59 : vector<1x256xi32>
      %61 = arith.andi %58, %60 : vector<1x256xi1>
      %cst_16 = arith.constant 1.000000e+00 : f32
      %62 = vector.broadcast %cst_16 : f32 to vector<1x256xf32>
      %63 = arith.subf %62, %34 : vector<1x256xf32>
      %cst_17 = arith.constant 0.000000e+00 : f32
      %64 = vector.broadcast %cst_17 : f32 to vector<1x256xf32>
      %65 = arith.select %61, %63, %64 : vector<1x256xi1>, vector<1x256xf32>
      %c0_i32_18 = arith.constant 0 : i32
      %66 = vector.broadcast %c0_i32_18 : i32 to vector<1x256xi32>
      %67 = arith.cmpi sge, %40, %66 : vector<1x256xi32>
      %c16_i32_19 = arith.constant 16 : i32
      %68 = vector.broadcast %c16_i32_19 : i32 to vector<1x256xi32>
      %69 = arith.cmpi slt, %40, %68 : vector<1x256xi32>
      %70 = arith.andi %67, %69 : vector<1x256xi1>
      %cst_20 = arith.constant 0.000000e+00 : f32
      %71 = vector.broadcast %cst_20 : f32 to vector<1x256xf32>
      %72 = arith.select %70, %34, %71 : vector<1x256xi1>, vector<1x256xf32>
      %73 = tpu.iota {dimensions = array<i32: 0>} : vector<16x256xi32>
      %74 = tpu.iota {dimensions = array<i32: 0>} : vector<16x256xi32>
      %75 = vector.broadcast %35 : vector<1x256xi32> to vector<16x256xi32>
      %76 = arith.cmpi eq, %73, %75 : vector<16x256xi32>
      %cst_21 = arith.constant 0.000000e+00 : f32
      %77 = vector.shape_cast %49 : vector<1x256xf32> to vector<1x256xf32>
      %78 = vector.broadcast %77 : vector<1x256xf32> to vector<16x256xf32>
      %79 = vector.broadcast %cst_21 : f32 to vector<16x256xf32>
      %80 = arith.select %76, %78, %79 : vector<16x256xi1>, vector<16x256xf32>
      %81 = vector.broadcast %38 : vector<1x256xi32> to vector<16x256xi32>
      %82 = arith.cmpi eq, %73, %81 : vector<16x256xi32>
      %cst_22 = arith.constant 0.000000e+00 : f32
      %83 = vector.shape_cast %56 : vector<1x256xf32> to vector<1x256xf32>
      %84 = vector.broadcast %83 : vector<1x256xf32> to vector<16x256xf32>
      %85 = vector.broadcast %cst_22 : f32 to vector<16x256xf32>
      %86 = arith.select %82, %84, %85 : vector<16x256xi1>, vector<16x256xf32>
      %87 = arith.addf %80, %86 : vector<16x256xf32>
      %88 = vector.broadcast %36 : vector<1x256xi32> to vector<16x256xi32>
      %89 = arith.cmpi eq, %74, %88 : vector<16x256xi32>
      %cst_23 = arith.constant 0.000000e+00 : f32
      %90 = vector.shape_cast %65 : vector<1x256xf32> to vector<1x256xf32>
      %91 = vector.broadcast %90 : vector<1x256xf32> to vector<16x256xf32>
      %92 = vector.broadcast %cst_23 : f32 to vector<16x256xf32>
      %93 = arith.select %89, %91, %92 : vector<16x256xi1>, vector<16x256xf32>
      %94 = vector.broadcast %40 : vector<1x256xi32> to vector<16x256xi32>
      %95 = arith.cmpi eq, %74, %94 : vector<16x256xi32>
      %cst_24 = arith.constant 0.000000e+00 : f32
      %96 = vector.shape_cast %72 : vector<1x256xf32> to vector<1x256xf32>
      %97 = vector.broadcast %96 : vector<1x256xf32> to vector<16x256xf32>
      %98 = vector.broadcast %cst_24 : f32 to vector<16x256xf32>
      %99 = arith.select %95, %97, %98 : vector<16x256xi1>, vector<16x256xf32>
      %100 = arith.addf %93, %99 : vector<16x256xf32>
      %101 = arith.truncf %87 : vector<16x256xf32> to vector<16x256xbf16>
      %102 = arith.truncf %100 : vector<16x256xf32> to vector<16x256xbf16>
      %103 = vector.shape_cast %102 : vector<16x256xbf16> to vector<16x1x256xbf16>
      %104 = vector.shape_cast %101 : vector<16x256xbf16> to vector<1x16x256xbf16>
      %105 = vector.broadcast %103 : vector<16x1x256xbf16> to vector<16x16x256xbf16>
      %106 = vector.broadcast %104 : vector<1x16x256xbf16> to vector<16x16x256xbf16>
      %107 = arith.mulf %105, %106 : vector<16x16x256xbf16>
      %108 = vector.shape_cast %107 : vector<16x16x256xbf16> to vector<256x256xbf16>
      %c0_25 = arith.constant 0 : index
      %c0_26 = arith.constant 0 : index
      %c0_27 = arith.constant 0 : index
      %109 = vector.load %arg5[%c0_25, %c0_26, %c0_27] : memref<1x4x256xf32, #tpu.memory_space<vmem>>, vector<1x4x256xf32>
      %110 = vector.shape_cast %109 : vector<1x4x256xf32> to vector<4x256xf32>
      %111 = arith.truncf %110 : vector<4x256xf32> to vector<4x256xbf16>
      %cst_28 = arith.constant dense<0.000000e+00> : vector<4x256xf32>
      %112 = tpu.matmul %111, %108, %cst_28 {dimension_numbers = #tpu.dot_dimension_numbers<[1], [0], [0], [1], [0, 0, 1, 1], [], []>} : vector<4x256xbf16>, vector<256x256xbf16>, vector<4x256xf32> -> vector<4x256xf32>
      %c0_29 = arith.constant 0 : index
      %c0_30 = arith.constant 0 : index
      %c0_31 = arith.constant 0 : index
      %113 = vector.load %arg6[%c0_29, %c0_30, %c0_31] : memref<1x4x256xf32, #tpu.memory_space<vmem>>, vector<1x4x256xf32>
      %114 = vector.shape_cast %113 : vector<1x4x256xf32> to vector<4x256xf32>
      %115 = vector.shape_cast %112 : vector<4x256xf32> to vector<1x4x256xf32>
      tpu.vector_store %arg6[%c0_29, %c0_30, %c0_31], %115 {strides = array<i32>} : memref<1x4x256xf32, #tpu.memory_space<vmem>>, vector<1x4x256xf32>,
    } else {
    }
    return
  }
  func.func @transform_0(%arg0: i32, %arg1: i32) -> i32 {
    %c0_i32 = arith.constant 0 : i32
    %c0_i32_0 = arith.constant 0 : i32
    return %c0_i32 : i32
  }
  func.func @transform_1(%arg0: i32, %arg1: i32) -> i32 {
    %c0_i32 = arith.constant 0 : i32
    %c0_i32_0 = arith.constant 0 : i32
    return %c0_i32 : i32
  }
  func.func @transform_2(%arg0: i32, %arg1: i32) -> (i32, i32) {
    %c0_i32 = arith.constant 0 : i32
    %c0_i32_0 = arith.constant 0 : i32
    return %c0_i32, %arg1 : i32, i32
  }
  func.func @transform_3(%arg0: i32, %arg1: i32) -> (i32, i32, i32) {
    %c0_i32 = arith.constant 0 : i32
    %c0_i32_0 = arith.constant 0 : i32
    %c0_i32_1 = arith.constant 0 : i32
    return %arg0, %c0_i32, %c0_i32_0 : i32, i32, i32
  }
  func.func @transform_4(%arg0: i32, %arg1: i32) -> (i32, i32, i32) {
    %c0_i32 = arith.constant 0 : i32
    %c0_i32_0 = arith.constant 0 : i32
    return %arg0, %c0_i32, %arg1 : i32, i32, i32
  }
}

</mosaic_0001>

<bundles_post_ra>
// kernel: tpu_custom_call.1
= control target key start
LH: loop header
LB: loop body
LE: loop exit
PB: predicated region body
PF: predicated region fallthrough
CT: control target
= control target key end

     0   :  { %9 = vsyncpa [#allocation5], 0  ;;  %s1816_s0 = inlined_call_operand.hbm [shape: f32[4], index: 0, kind: input, shape index: {}]   ;;  %s1817_s1 = inlined_call_operand.vmem [shape: s32[2], index: 1, kind: input, shape index: {}]   ;;  %s1818_s2 = inlined_call_operand.vmem [shape: f32[2,256], index: 2, kind: input, shape index: {}]   ;;  %s1819_s3 = inlined_call_operand.hbm [shape: f32[2,4,256], index: 3, kind: input, shape index: {}]   ;;  %s1820_s4 = inlined_call_operand.hbm [shape: f32[2,4,256], index: 4, kind: output, shape index: {}]  }
   0x1   :  { %10 = vsyncpa [#allocation6], 0 }
   0x2   :  { %11 = vsyncpa [#allocation3], 0 }
   0x3   :  { %13 = vsyncpa [#allocation3 + $0x1], 0 }
   0x4   :  { %14 = vsyncpa [#allocation4], 0 }
   0x5   :  { %16 = vsyncpa [#allocation4 + $0x1], 0  ;;  %s1422_s15 = smov 0   ;;  %s1424_s16 = smov 0  }
   0x6   :  { %s1426_s17 = smov 0   ;;  %s1428_s18 = smov 0  }
   0x7   :  { %s1430_s19 = smov 0   ;;  %s1432_s20 = smov 0  }
   0x8 LB: > { %s1117_s21 = sadd.s32 4294967295, %s1390_s20   ;;  %s1118_s22 = sadd.s32 4294967294, %s1390_s20   ;;  %s1390_s20 = sphi %s1432_s20, %s22_s20   ;;  %s1386_s19 = sphi %s1430_s19, %s1843_s19   ;;  %s1382_s18 = sphi %s1428_s18, %s1842_s18   ;;  %s1378_s17 = sphi %s1426_s17, %s1841_s17   ;;  %s1374_s16 = sphi %s1424_s16, %s1840_s16   ;;  %s1370_s15 = sphi %s1422_s15, %s1839_s15  }
   0x9   : > { %p122_p0 = scmp.ne.s32.totalorder %s1374_s16, %s1370_s15  ;;  %p1456_p1 = scmp.eq.s32.totalorder %s1117_s21, 0 }
   0xa   : > { %p1460_p2 = scmp.eq.s32.totalorder %s1117_s21, 1  ;;  %p154_p3 = scmp.eq.s32.totalorder %s1118_s22, 1 }
   0xb   : > { %s1825_s23 = scalar_select %p1456_p1, 1, 0 }
   0xc   : > { %p1466_p4 = por %p1456_p1, %p122_p0  ;;  %p1119_p5 = scmp.ge.s32.totalorder %s1390_s20, 1 }
   0xd   : > { %p1471_p6 = por %p154_p3, %p122_p0  ;;  %p161_p7 = scmp.lt.s32.totalorder %s1390_s20, 3 }
   0xe   : > { %s1827_s25 = scalar_select %p1466_p4, 1, 0 }
   0xf   : > { %s1828_s26 = scalar_select %p1471_p6, 1, 0 }
  0x10   : > { %p1476_p8 = pnand %p1119_p5, %p161_p7  ;;  %s183_s30 = sshll.u32 %s1817_s1, 4  ;;  %s184_s30 = int_to_ptr.vmem [resolvable:$true] %s183_s30 }
  0x11   : > { %s34_s6 = sadd.s32 1, %s1386_s19  ;;  %s1242_s10 = scalar_lea.hbm %s1816_s0, 16 }
  0x12   : > { %s1829_s27 = scalar_select %p1476_p8, 1, 0 }
  0x13   : > { %p1169_p10 = pneg %p1476_p8  ;;  %p1493_p12 = scmp.ge.s32.totalorder %s34_s6, 2 }
  0x14   : > { %p1243_p13 = scmp.ne.s32.totalorder %s1816_s0, %s1242_s10  ;;  %p1249_p7 = scmp.lt.u32.totalorder %s1242_s10, %s1816_s0 }
  0x15   : > { %p1488_p11 = pnand %p1169_p10, %p1456_p1 }
  0x17   : > { %p1244_p0 = pneg %p1488_p11 }
  0x19   : > { %p1245_p3 = pnand %p1244_p0, %p1243_p13 }
  0x1b   : > { %p1246_p5 = pneg %p1245_p3 }
  0x1d   : > { %p1251_p10 = pnand %p1249_p7, %p1246_p5 }
  0x1f   : > { %1254 = shalt.err (!%p1251_p10)
}
  0x20   : > { %s1392_s21 = smov [#allocation2]   ;;  %s1255_s29 = scalar_lea.vmem %s184_s30, 16 }
  0x21   : > { %1172 = dma.hbm_to_smem (!%p1488_p11), %s1816_s0, 16, %s1392_s21, [#allocation5]  }
  0x22   : > { %p1256_p9 = scmp.ne.s32.totalorder %s184_s30, %s1255_s29  ;;  %p1263_p1 = scmp.lt.s32.totalorder %s184_s30, %s184_s30 }
  0x23   : > { %p1264_p13 = scmp.lt.s32.totalorder %s1255_s29, %s1255_s29 }
  0x24   : > { %p1258_p6 = pnand %p1256_p9, %p1244_p0 }
  0x25   : > { %p1265_p3 = por %p1264_p13, %p1263_p1 }
  0x26   : > { %p1259_p4 = pneg %p1258_p6 }
  0x28   : > { %p1266_p8 = pnand %p1265_p3, %p1259_p4 }
  0x2a   : > { %1269 = shalt.err (!%p1266_p8)
}
  0x2b   : > { %s1393_s8 = smov [#allocation7]   ;;  %s1845_s6 = smov (%p1493_p12, %s34_s6), 0 }
  0x2c   : > { %1175 = dma.vmem_to_smem (!%p1488_p11), %s184_s30, 16, %s1393_s8, [#allocation6]  }
  0x2d   : > { %s109_s9 = sadd.s32 1, %s1378_s17  ;;  %p116_p1 = scmp.ne.s32.totalorder %s1378_s17, %s1374_s16 }
  0x2e   : > { %s106_s10 = ssub.s32 %s1386_s19, %s1845_s6  ;;  %p117_p4 = scmp.eq.s32.totalorder %s1390_s20, 0 }
  0x2f   : > { %p107_p6 = scmp.eq.s32.totalorder %s106_s10, 0  ;;  %p1527_p8 = por %p1460_p2, %p116_p1 }
  0x30   : > { %p118_p9 = por %p117_p4, %p116_p1  ;;  %p1186_p0 = scmp.lt.s32.totalorder %s1390_s20, 2 }
  0x31   : > { %s1533_s11 = scalar_select %p107_p6, %s1378_s17, %s109_s9  }
  0x32   : > { %s203_s12 = sand.u32 1, %s1378_s17   ;;  %s1151_s30 = sshll.u32 %s1386_s19, 7 }
  0x33   : > { %s1124_s7 = sshll.u32 %s203_s12, 3  ;;  %s1540_s21 = scalar_lea.hbm %s1819_s3, %s1151_s30 }
  0x34   : > { %s207_s24 = scalar_lea.vmem [#allocation8], %s1124_s7  ;;  %p1542_p2 = pnand %p1186_p0, %p118_p9 }
  0x35   : > { %s215_s22 = sshll.u32 %s207_s24, 4  ;;  %s204_s29 = scalar_lea.sflag [#allocation3], %s203_s12  ;;  %s1546_s22 = int_to_ptr.vmem [resolvable:$true] %s215_s22 }
  0x36   : > { %s1270_s8 = scalar_lea.hbm %s1540_s21, 128  ;;  %p1272_p12 = pneg %p1542_p2 }
  0x37   : > { %p1271_p11 = scmp.ne.s32.totalorder %s1540_s21, %s1270_s8  ;;  %s1275_s30 = scalar_lea.hbm %s1819_s3, 256 }
  0x38   : > { %p1276_p10 = scmp.lt.u32.totalorder %s1540_s21, %s1819_s3  ;;  %p1277_p13 = scmp.lt.u32.totalorder %s1275_s30, %s1270_s8 }
  0x39   : > { %p1273_p5 = pnand %p1272_p12, %p1271_p11  ;;  %p1279_p1 = scmp.lt.u32.totalorder %s1270_s8, %s1540_s21 }
  0x3a   : > { %p1278_p3 = por %p1277_p13, %p1276_p10 }
  0x3b   : > { %p1274_p7 = pneg %p1273_p5 }
  0x3c   : > { %p1280_p4 = por %p1279_p1, %p1278_p3 }
  0x3e   : > { %p1281_p6 = pnand %p1280_p4, %p1274_p7 }
  0x40   : > { %1284 = shalt.err (!%p1281_p6)
}
  0x41   : > { %s1285_s12 = scalar_lea.vmem %s1546_s22, 128  ;;  %s1394_s14 = smov [#allocation8]  }
  0x42   : > { %p1286_p9 = scmp.ne.s32.totalorder %s1546_s22, %s1285_s12  ;;  %s1290_s24 = sshll.u32 %s1394_s14, 4  ;;  %s1291_s24 = int_to_ptr.vmem [resolvable:$false] %s1290_s24 }
  0x43   : > { %s1292_s9 = scalar_lea.vmem %s1291_s24, 256  ;;  %p1293_p5 = scmp.lt.s32.totalorder %s1546_s22, %s1291_s24 }
  0x44   : > { %p1288_p0 = pnand %p1286_p9, %p1272_p12  ;;  %p1294_p10 = scmp.lt.s32.totalorder %s1292_s9, %s1285_s12 }
  0x46   : > { %p1289_p11 = pneg %p1288_p0  ;;  %p1295_p13 = por %p1294_p10, %p1293_p5 }
  0x48   : > { %p1296_p3 = pnand %p1295_p13, %p1289_p11 }
  0x4a   : > { %1299 = shalt.err (!%p1296_p3)
}
  0x4b   : > { %1179 = dma.hbm_to_vmem [thread:$0]  (!%p1542_p2), %s1540_s21, 128, %s1546_s22, %s204_s29  }
  0x4c   : > { %p1834_p7 = scmp.ne.s32.totalorder %s1829_s27, 0 }
  0x4d   : > { %p1835_p12 = scmp.ne.s32.totalorder (!%p1834_p7), %s1825_s23, 0 }
  0x4e   : > { %224 = sbr.rel (%p1834_p7) target bundleno = 468 (0x1d4), region = 36 }
  0x55   : > { %1353 = dma.done.wait (%p1835_p12), [#allocation5], 16  }
  0x56   : > { %1355 = vsyncadd (%p1835_p12), [#allocation5], 4294967280 }
  0x57   : > { %1357 = dma.done.wait (%p1835_p12), [#allocation6], 16  }
  0x58   : > { %1359 = vsyncadd (%p1835_p12), [#allocation6], 4294967280  ;;  %s1584_s28 = sand.u32 1, %s1374_s16   ;;  %p1836_p2 = scmp.ne.s32.totalorder %s1827_s25, 0 }
  0x59   : > { %s1130_s27 = sshll.u32 %s1584_s28, 3  ;;  %s235_s21 = scalar_lea.sflag [#allocation3], %s1584_s28 }
  0x5a   : > { %s238_s22 = scalar_lea.vmem [#allocation8], %s1130_s27 }
  0x5b   : > { %1361 = dma.done.wait (%p1836_p2), %s235_s21, 128  }
  0x5c   : > { %1363 = vsyncadd (%p1836_p2), %s235_s21, 4294967168 }
  0x5d   : > { %243 = sfence }
  0x5e   : > { %s276_s29 = sld [smem:[#allocation7 + %s1382_s18]]  ;;  %s1593_s8 = scalar_lea.vmem [#allocation9], %s1130_s27 }
  0x64   : > { %p1132_p1 = scmp.ne.s32.totalorder %s276_s29, 0 }
  0x65   : > { %v287_v0 = vld [vmem:[%s238_s22] sm:$0xff] (!%p1132_p1) }
  0x66   : > { %281 = sbr.rel (%p1132_p1) target bundleno = 109 (0x6d), region = 52  ;;  %288 = vst [vmem:[%s1593_s8] sm:$0xff] (!%p1132_p1), %v287_v0 }
  0x6d PF: > { %p1133_p4 = scmp.eq.s32.totalorder %s276_s29, 0 }
  0x6e   : > { %s1134_s23 = sshll.u32 (!%p1133_p4), %s1382_s18, 1  ;;  %v1597_v1 = vld [vmem:[%s238_s22] sm:$0xff] (!%p1133_p4)  ;;  %v1135_v4 = vld [vmem:[%s1818_s2 + $0x1] ss:$2 sm:$0x3] (!%p1133_p4)  ;;  %v335_v14 = vlaneseq (!%p1133_p4) }
  0x6f   : > { %291 = sbr.rel (%p1133_p4) target bundleno = 444 (0x1bc), region = 56  ;;  %s293_s10 = sld [smem:[#allocation2 + %s1134_s23]] (!%p1133_p4)  ;;  %v928_v2 = vcombine.high (!%p1133_p4), %v1597_v1, %v1597_v1  ;;  %v296_v5 = vld [vmem:[%s1818_s2] ss:$2 sm:$0x3] (!%p1133_p4) }
  0x70   : > { %s294_s30 = sadd.s32 (!%p1133_p4), 1, %s1134_s23  ;;  %v1607_v19 = vshrl.u32 (!%p1133_p4), %v335_v14, 7  ;;  %v1395_v26 = vmov (!%p1133_p4), 1966171168  }
  0x71   : > { %s295_s25 = sld [smem:[#allocation2 + %s294_s30]] (!%p1133_p4)  ;;  %v931_v3 = vpack.c.bf16 (!%p1133_p4), %v928_v2, %v928_v2  ;;  %v463_v27 = vunpack.c.l.s4 (!%p1133_p4), %v1395_v26 }
  0x72   : > { %v1610_v29 = vadd.s32 (!%p1133_p4), 8, %v1607_v19  ;;  %v1613_v30 = vsub.s32 (!%p1133_p4), 0, %v1607_v19  ;;  %v1616_v31 = vsub.s32 (!%p1133_p4), 1, %v1607_v19 }
  0x73   : > { %964 = vmatprep.mubr.bf16.mxu0 (!%p1133_p4), %v931_v3  ;;  %v464_v38 = vunpack.c.0.s8 (!%p1133_p4), %v463_v27 }
  0x75   : > { %v299_v6 = vstv (!%p1133_p4), %s293_s10  ;;  %v1631_v46 = vsub.s32 (!%p1133_p4), %v464_v38, %v1607_v19 }
  0x76   : > { %v300_v7 = vmul.f32 %v299_v6, %v296_v5  ;;  %v306_v9 = vmul.f32 %v1135_v4, %v299_v6 }
  0x77   : > { %v301_v8 = vstv %s295_s25 }
  0x78   : > { %v302_v10 = vmul.f32 %v1135_v4, %v301_v8  ;;  %v305_v11 = vmul.f32 %v301_v8, %v296_v5 }
  0x7a   : > { %v303_v12 = vsub.f32 %v300_v7, %v302_v10  ;;  %v307_v13 = vadd.f32 %v306_v9, %v305_v11 }
  0x7c   : > { %v304_v15 = vadd.f32 7.5, %v303_v12  ;;  %v308_v16 = vadd.f32 7.5, %v307_v13 }
  0x7e   : > { %v309_v17 = vfloor.f32 %v304_v15  ;;  %v310_v18 = vfloor.f32 %v308_v16 }
  0x80   : > { %v311_v20 = vsub.f32 %v304_v15, %v309_v17  ;;  %v1153_v21 = vtrunc.f32 %v309_v17  ;;  %v1155_v22 = vtrunc.f32 %v310_v18  ;;  %v312_v28 = vsub.f32 %v308_v16, %v310_v18 }
  0x82   : > { %v1154_v23 = vcvt.f32.s32 %v1153_v21  ;;  %v1156_v24 = vcvt.f32.s32 %v1155_v22  ;;  %v320_v25 = vsub.f32 1.0, %v311_v20  ;;  %v329_v37 = vsub.f32 1.0, %v312_v28 }
  0x84   : > { %v315_v32 = vadd.s32 1, %v1154_v23  ;;  %v316_v33 = vadd.s32 1, %v1156_v24  ;;  %vm317_vm0 = vcmp.ge.s32.totalorder %v1154_v23, 0  ;;  %vm318_vm1 = vcmp.lt.s32.totalorder %v1154_v23, 16 }
  0x85   : > { %vm319_vm2 = vmand %vm317_vm0, %vm318_vm1  ;;  %vm326_vm3 = vcmp.ge.s32.totalorder %v1156_v24, 0  ;;  %vm327_vm4 = vcmp.lt.s32.totalorder %v1156_v24, 16  ;;  %v341_v34 = vrot.slane %v1154_v23, %v1613_v30  ;;  %v345_v35 = vrot.slane %v1154_v23, %v1616_v31 }
  0x86   : > { %v321_v36 = vsel %vm319_vm2, %v320_v25, 0.0  ;;  %vm322_vm5 = vcmp.ge.s32.totalorder %v315_v32, 0  ;;  %vm323_vm6 = vcmp.lt.s32.totalorder %v315_v32, 16  ;;  %vm331_vm7 = vcmp.ge.s32.totalorder %v316_v33, 0  ;;  %vm328_vm10 = vmand %vm326_vm3, %vm327_vm4 }
  0x87   : > { %vm324_vm8 = vmand %vm322_vm5, %vm323_vm6  ;;  %vm332_vm9 = vcmp.lt.s32.totalorder %v316_v33, 16  ;;  %vm346_vm11 = vcmp.eq.s32.totalorder %v1607_v19, %v341_v34  ;;  %v354_v40 = vrot.slane %v321_v36, %v1613_v30  ;;  %vm348_vm13 = vcmp.eq.s32.totalorder %v1610_v29, %v341_v34 }
  0x88   : > { %v325_v39 = vsel %vm324_vm8, %v311_v20, 0.0  ;;  %vm333_vm12 = vmand %vm331_vm7, %vm332_vm9  ;;  %v358_v41 = vrot.slane %v321_v36, %v1616_v31  ;;  %v368_v42 = vrot.slane %v315_v32, %v1613_v30  ;;  %v372_v43 = vrot.slane %v315_v32, %v1616_v31 }
  0x89   : > { %vm347_vm14 = vcmp.eq.s32.totalorder %v1607_v19, %v345_v35  ;;  %vm349_vm15 = vcmp.eq.s32.totalorder %v1610_v29, %v345_v35  ;;  %v381_v44 = vrot.slane %v325_v39, %v1613_v30  ;;  %v330_v45 = vsel %vm328_vm10, %v329_v37, 0.0 }
  0x8a   : > { %vm373_vm0 = vcmp.eq.s32.totalorder %v1607_v19, %v368_v42  ;;  %v334_v47 = vsel %vm333_vm12, %v312_v28, 0.0  ;;  %v361_v48 = vsel %vm346_vm11, %v354_v40, 0.0  ;;  %v363_v49 = vsel %vm348_vm13, %v354_v40, 0.0 }
  0x8b   : > { %v385_v50 = vrot.slane %v325_v39, %v1616_v31  ;;  %v362_v51 = vsel %vm347_vm14, %v358_v41, 0.0  ;;  %v364_v52 = vsel %vm349_vm15, %v358_v41, 0.0  ;;  %vm374_vm1 = vcmp.eq.s32.totalorder %v1607_v19, %v372_v43 }
  0x8c   : > { %vm375_vm2 = vcmp.eq.s32.totalorder %v1610_v29, %v368_v42  ;;  %vm376_vm3 = vcmp.eq.s32.totalorder %v1610_v29, %v372_v43  ;;  %v388_v53 = vsel %vm373_vm0, %v381_v44, 0.0  ;;  %v399_v54 = vrot.slane %v1156_v24, %v1613_v30 }
  0x8d   : > { %v403_v55 = vrot.slane %v1156_v24, %v1616_v31  ;;  %v412_v56 = vrot.slane %v330_v45, %v1613_v30  ;;  %v416_v57 = vrot.slane %v330_v45, %v1616_v31  ;;  %v426_v58 = vrot.slane %v316_v33, %v1613_v30 }
  0x8e   : > { %v430_v59 = vrot.slane %v316_v33, %v1616_v31  ;;  %vm404_vm4 = vcmp.eq.s32.totalorder %v1607_v19, %v399_v54  ;;  %v439_v60 = vrot.slane %v334_v47, %v1613_v30  ;;  %v443_v61 = vrot.slane %v334_v47, %v1616_v31 }
  0x8f   : > { %vm405_vm5 = vcmp.eq.s32.totalorder %v1607_v19, %v403_v55  ;;  %v419_v62 = vsel %vm404_vm4, %v412_v56, 0.0  ;;  %vm431_vm6 = vcmp.eq.s32.totalorder %v1607_v19, %v426_v58  ;;  %v389_v0 = vsel %vm374_vm1, %v385_v50, 0.0 }
  0x90   : > { %v420_v63 = vsel %vm405_vm5, %v416_v57, 0.0  ;;  %vm432_vm7 = vcmp.eq.s32.totalorder %v1607_v19, %v430_v59  ;;  %v390_v2 = vsel %vm375_vm2, %v381_v44, 0.0  ;;  %v446_v3 = vsel %vm431_vm6, %v439_v60, 0.0 }
  0x91   : > { %v447_v4 = vsel %vm432_vm7, %v443_v61, 0.0  ;;  %v450_v5 = vadd.f32 %v446_v3, %v419_v62  ;;  %vm406_vm8 = vcmp.eq.s32.totalorder %v1610_v29, %v399_v54  ;;  %vm407_vm9 = vcmp.eq.s32.totalorder %v1610_v29, %v403_v55 }
  0x92   : > { %v451_v6 = vadd.f32 %v447_v4, %v420_v63  ;;  %v391_v7 = vsel %vm376_vm3, %v385_v50, 0.0  ;;  %v421_v8 = vsel %vm406_vm8, %v412_v56, 0.0  ;;  %vm433_vm10 = vcmp.eq.s32.totalorder %v1610_v29, %v426_v58 }
  0x93   : > { %vm434_vm11 = vcmp.eq.s32.totalorder %v1610_v29, %v430_v59  ;;  %v422_v10 = vsel %vm407_vm9, %v416_v57, 0.0  ;;  %v448_v11 = vsel %vm433_vm10, %v439_v60, 0.0  ;;  %v392_v13 = vadd.f32 %v388_v53, %v361_v48 }
  0x94   : > { %v1136_v9 = vpack.c.bf16 %v451_v6, %v450_v5  ;;  %v449_v12 = vsel %vm434_vm11, %v443_v61, 0.0  ;;  %v393_v14 = vadd.f32 %v389_v0, %v362_v51  ;;  %v394_v16 = vadd.f32 %v390_v2, %v363_v49 }
  0x95   : > { %v395_v17 = vadd.f32 %v391_v7, %v364_v52  ;;  %v452_v18 = vadd.f32 %v448_v11, %v421_v8  ;;  %v453_v19 = vadd.f32 %v449_v12, %v422_v10 }
  0x96   : > { %v468_v15 = vrot.slane %v1136_v9, %v1631_v46  ;;  %v1662_v26 = vpack.c.bf16 %v394_v16, %v392_v13 }
  0x97   : > { %v1664_v27 = vpack.c.bf16 %v395_v17, %v393_v14  ;;  %v1137_v28 = vpack.c.bf16 %v453_v19, %v452_v18 }
  0x98   : > { %v476_v20 = vcombine.high %v468_v15, %v468_v15  ;;  %v484_v21 = vrot.slane %v468_v15, %v1631_v46 }
  0x99   : > { %v475_v0 = vrot.slane %v1137_v28, %v1631_v46 }
  0x9a   : > { %v1138_v22 = vpack.i.b16 %v484_v21, %v484_v21  ;;  %v511_v23 = vunpack.i.h.s16 %v484_v21  ;;  %v498_v24 = vrot.slane %v476_v20, %v1631_v46  ;;  %v506_v25 = vcombine.high %v484_v21, %v484_v21 }
  0x9b   : > { %v491_v13 = vrot.slane %v475_v0, %v1631_v46 }
  0x9c   : > { %v549_v29 = vrot.slane %v1138_v22, %v1616_v31  ;;  %v545_v32 = vrot.slane %v1138_v22, %v1613_v30  ;;  %v527_v33 = vpack.i.b16 %v511_v23, %v511_v23  ;;  %v1139_v34 = vpack.i.b16 %v498_v24, %v498_v24 }
  0x9d   : > { %v513_v35 = vunpack.i.h.s16 %v498_v24  ;;  %v1140_v36 = vpack.i.b16 %v506_v25, %v506_v25  ;;  %v515_v37 = vunpack.i.h.s16 %v506_v25  ;;  %v508_v38 = vcombine.high %v498_v24, %v498_v24 }
  0x9e   : > { %v678_v39 = vpack.i.b16 %v549_v29, %v549_v29  ;;  %v671_v40 = vpack.i.b16 %v545_v32, %v545_v32  ;;  %v557_v41 = vrot.slane %v527_v33, %v1616_v31  ;;  %v553_v42 = vrot.slane %v527_v33, %v1613_v30 }
  0x9f   : > { %v565_v43 = vrot.slane %v1139_v34, %v1616_v31  ;;  %v561_v44 = vrot.slane %v1139_v34, %v1613_v30  ;;  %v529_v45 = vpack.i.b16 %v513_v35, %v513_v35  ;;  %v581_v47 = vrot.slane %v1140_v36, %v1616_v31 }
  0xa0   : > { %v683_v48 = vrot.slane %v678_v39, %v1613_v30  ;;  %v676_v49 = vrot.slane %v671_v40, %v1613_v30  ;;  %v692_v50 = vpack.i.b16 %v557_v41, %v557_v41  ;;  %v685_v51 = vpack.i.b16 %v553_v42, %v553_v42 }
  0xa1   : > { %v706_v52 = vpack.i.b16 %v565_v43, %v565_v43  ;;  %v699_v53 = vpack.i.b16 %v561_v44, %v561_v44  ;;  %v573_v54 = vrot.slane %v529_v45, %v1616_v31  ;;  %v569_v55 = vrot.slane %v529_v45, %v1613_v30 }
  0xa2   : > { %v895_v56 = vmul.bf16 %v683_v48, %v1664_v27  ;;  %v894_v57 = vmul.bf16 %v676_v49, %v1662_v26  ;;  %v697_v58 = vrot.slane %v692_v50, %v1613_v30  ;;  %v690_v59 = vrot.slane %v685_v51, %v1613_v30 }
  0xa3   : > { %v711_v60 = vrot.slane %v706_v52, %v1613_v30  ;;  %v720_v61 = vpack.i.b16 %v573_v54, %v573_v54  ;;  %v577_v63 = vrot.slane %v1140_v36, %v1613_v30  ;;  %v704_v3 = vrot.slane %v699_v53, %v1613_v30 }
  0xa4   : > { %932 = vmatprep.subr.bf16.mxu0 %v895_v56  ;;  %v897_v62 = vmul.bf16 %v697_v58, %v1664_v27  ;;  %v896_v2 = vmul.bf16 %v690_v59, %v1662_v26  ;;  %v713_v4 = vpack.i.b16 %v569_v55, %v569_v55  ;;  %v734_v5 = vpack.i.b16 %v581_v47, %v581_v47 }
  0xa5   : > { %933 = vmatpush1.bf16.msra.mxu0 %v894_v57  ;;  %v899_v6 = vmul.bf16 %v711_v60, %v1664_v27  ;;  %v725_v7 = vrot.slane %v720_v61, %v1613_v30  ;;  %v531_v8 = vpack.i.b16 %v515_v37, %v515_v37  ;;  %v1141_v9 = vpack.i.b16 %v508_v38, %v508_v38 }
  0xa6   : > { %934 = vmatprep.subr.bf16.mxu0 %v897_v62  ;;  %v517_v10 = vunpack.i.h.s16 %v508_v38  ;;  %v727_v11 = vpack.i.b16 %v577_v63, %v577_v63  ;;  %v898_v14 = vmul.bf16 %v704_v3, %v1662_v26  ;;  %v718_v15 = vrot.slane %v713_v4, %v1613_v30 }
  0xa7   : > { %v589_v12 = vrot.slane %v531_v8, %v1616_v31  ;;  %v739_v16 = vrot.slane %v734_v5, %v1613_v30  ;;  %v585_v17 = vrot.slane %v531_v8, %v1613_v30  ;;  %v901_v18 = vmul.bf16 %v725_v7, %v1664_v27 }
  0xa8   : > { %v597_v20 = vrot.slane %v1141_v9, %v1616_v31  ;;  %v533_v21 = vpack.i.b16 %v517_v10, %v517_v10  ;;  %v732_v22 = vrot.slane %v727_v11, %v1613_v30  ;;  %v1142_v23 = vpack.i.b16 %v491_v13, %v491_v13 }
  0xa9   : > { %935 = vmatpush1.bf16.msra.mxu0 %v896_v2  ;;  %v748_v19 = vpack.i.b16 %v589_v12, %v589_v12  ;;  %v900_v24 = vmul.bf16 %v718_v15, %v1662_v26  ;;  %v741_v25 = vpack.i.b16 %v585_v17, %v585_v17  ;;  %v593_v28 = vrot.slane %v1141_v9, %v1613_v30 }
  0xaa   : > { %936 = vmatprep.subr.bf16.mxu0 %v899_v6  ;;  %v477_v29 = vcombine.high %v475_v0, %v475_v0  ;;  %v903_v32 = vmul.bf16 %v739_v16, %v1664_v27  ;;  %v762_v34 = vpack.i.b16 %v597_v20, %v597_v20  ;;  %v605_v35 = vrot.slane %v533_v21, %v1616_v31 }
  0xab   : > { %v753_v33 = vrot.slane %v748_v19, %v1613_v30  ;;  %v902_v36 = vmul.bf16 %v732_v22, %v1662_v26  ;;  %v613_v37 = vrot.slane %v1142_v23, %v1616_v31  ;;  %v519_v38 = vunpack.i.h.s16 %v491_v13 }
  0xac   : > { %v746_v39 = vrot.slane %v741_v25, %v1613_v30  ;;  %v755_v40 = vpack.i.b16 %v593_v28, %v593_v28  ;;  %v601_v41 = vrot.slane %v533_v21, %v1613_v30  ;;  %v505_v42 = vrot.slane %v477_v29, %v1631_v46 }
  0xad   : > { %937 = vmatpush1.bf16.msra.mxu0 %v898_v14  ;;  %v905_v43 = vmul.bf16 %v753_v33, %v1664_v27  ;;  %v767_v44 = vrot.slane %v762_v34, %v1613_v30  ;;  %v776_v45 = vpack.i.b16 %v605_v35, %v605_v35  ;;  %v535_v47 = vpack.i.b16 %v519_v38, %v519_v38 }
  0xae   : > { %938 = vmatprep.subr.bf16.mxu0 %v901_v18  ;;  %v790_v48 = vpack.i.b16 %v613_v37, %v613_v37  ;;  %v609_v49 = vrot.slane %v1142_v23, %v1613_v30  ;;  %v904_v50 = vmul.bf16 %v746_v39, %v1662_v26  ;;  %v760_v51 = vrot.slane %v755_v40, %v1613_v30 }
  0xaf   : > { %v769_v52 = vpack.i.b16 %v601_v41, %v601_v41  ;;  %v1143_v53 = vpack.i.b16 %v505_v42, %v505_v42  ;;  %v907_v46 = vmul.bf16 %v767_v44, %v1664_v27  ;;  %v781_v54 = vrot.slane %v776_v45, %v1613_v30 }
  0xb0   : > { %v621_v55 = vrot.slane %v535_v47, %v1616_v31  ;;  %v521_v56 = vunpack.i.h.s16 %v505_v42  ;;  %v783_v57 = vpack.i.b16 %v609_v49, %v609_v49  ;;  %v507_v58 = vcombine.high %v491_v13, %v491_v13 }
  0xb1   : > { %939 = vmatpush1.bf16.msra.mxu0 %v900_v24  ;;  %v906_v59 = vmul.bf16 %v760_v51, %v1662_v26  ;;  %v774_v60 = vrot.slane %v769_v52, %v1613_v30  ;;  %v617_v61 = vrot.slane %v535_v47, %v1613_v30  ;;  %v629_v62 = vrot.slane %v1143_v53, %v1616_v31 }
  0xb2   : > { %940 = vmatprep.subr.bf16.mxu0 %v903_v32  ;;  %v909_v63 = vmul.bf16 %v781_v54, %v1664_v27  ;;  %v795_v0 = vrot.slane %v790_v48, %v1613_v30  ;;  %v804_v2 = vpack.i.b16 %v621_v55, %v621_v55  ;;  %v537_v3 = vpack.i.b16 %v521_v56, %v521_v56 }
  0xb3   : > { %v788_v4 = vrot.slane %v783_v57, %v1613_v30  ;;  %v1144_v5 = vpack.i.b16 %v507_v58, %v507_v58  ;;  %v908_v6 = vmul.bf16 %v774_v60, %v1662_v26  ;;  %v797_v7 = vpack.i.b16 %v617_v61, %v617_v61 }
  0xb4   : > { %v818_v8 = vpack.i.b16 %v629_v62, %v629_v62  ;;  %v625_v9 = vrot.slane %v1143_v53, %v1613_v30  ;;  %v911_v10 = vmul.bf16 %v795_v0, %v1664_v27  ;;  %v809_v11 = vrot.slane %v804_v2, %v1613_v30 }
  0xb5   : > { %941 = vmatpush1.bf16.msra.mxu0 %v902_v36  ;;  %v637_v12 = vrot.slane %v537_v3, %v1616_v31  ;;  %v523_v13 = vunpack.i.h.s16 %v507_v58  ;;  %v910_v14 = vmul.bf16 %v788_v4, %v1662_v26  ;;  %v645_v15 = vrot.slane %v1144_v5, %v1616_v31 }
  0xb6   : > { %942 = vmatprep.subr.bf16.mxu0 %v905_v43  ;;  %v802_v16 = vrot.slane %v797_v7, %v1613_v30  ;;  %v823_v17 = vrot.slane %v818_v8, %v1613_v30  ;;  %v811_v18 = vpack.i.b16 %v625_v9, %v625_v9  ;;  %v633_v19 = vrot.slane %v537_v3, %v1613_v30 }
  0xb7   : > { %v913_v20 = vmul.bf16 %v809_v11, %v1664_v27  ;;  %v832_v21 = vpack.i.b16 %v637_v12, %v637_v12  ;;  %v539_v22 = vpack.i.b16 %v523_v13, %v523_v13  ;;  %v509_v23 = vcombine.high %v505_v42, %v505_v42 }
  0xb8   : > { %v846_v24 = vpack.i.b16 %v645_v15, %v645_v15  ;;  %v641_v25 = vrot.slane %v1144_v5, %v1613_v30  ;;  %v912_v28 = vmul.bf16 %v802_v16, %v1662_v26  ;;  %v915_v29 = vmul.bf16 %v823_v17, %v1664_v27 }
  0xb9   : > { %943 = vmatpush1.bf16.msra.mxu0 %v904_v50  ;;  %v816_v32 = vrot.slane %v811_v18, %v1613_v30  ;;  %v825_v33 = vpack.i.b16 %v633_v19, %v633_v19  ;;  %v837_v34 = vrot.slane %v832_v21, %v1613_v30  ;;  %v653_v35 = vrot.slane %v539_v22, %v1616_v31 }
  0xba   : > { %944 = vmatprep.subr.bf16.mxu0 %v907_v46  ;;  %v1145_v36 = vpack.i.b16 %v509_v23, %v509_v23  ;;  %v525_v37 = vunpack.i.h.s16 %v509_v23  ;;  %v839_v38 = vpack.i.b16 %v641_v25, %v641_v25  ;;  %v851_v41 = vrot.slane %v846_v24, %v1613_v30 }
  0xbb   : > { %v914_v39 = vmul.bf16 %v816_v32, %v1662_v26  ;;  %v830_v40 = vrot.slane %v825_v33, %v1613_v30  ;;  %v649_v42 = vrot.slane %v539_v22, %v1613_v30  ;;  %v917_v43 = vmul.bf16 %v837_v34, %v1664_v27 }
  0xbc   : > { %v860_v44 = vpack.i.b16 %v653_v35, %v653_v35  ;;  %v661_v45 = vrot.slane %v1145_v36, %v1616_v31  ;;  %v541_v47 = vpack.i.b16 %v525_v37, %v525_v37  ;;  %v844_v49 = vrot.slane %v839_v38, %v1613_v30 }
  0xbd   : > { %945 = vmatpush1.bf16.msra.mxu0 %v906_v59  ;;  %v916_v48 = vmul.bf16 %v830_v40, %v1662_v26  ;;  %v853_v50 = vpack.i.b16 %v649_v42, %v649_v42  ;;  %v657_v51 = vrot.slane %v1145_v36, %v1613_v30  ;;  %v919_v52 = vmul.bf16 %v851_v41, %v1664_v27 }
  0xbe   : > { %946 = vmatprep.subr.bf16.mxu0 %v909_v63  ;;  %v865_v53 = vrot.slane %v860_v44, %v1613_v30  ;;  %v874_v46 = vpack.i.b16 %v661_v45, %v661_v45  ;;  %v669_v54 = vrot.slane %v541_v47, %v1616_v31  ;;  %v918_v55 = vmul.bf16 %v844_v49, %v1662_v26 }
  0xbf   : > { %v858_v56 = vrot.slane %v853_v50, %v1613_v30  ;;  %v867_v57 = vpack.i.b16 %v657_v51, %v657_v51  ;;  %v665_v58 = vrot.slane %v541_v47, %v1613_v30  ;;  %v930_v7 = vpack.c.bf16 %v1597_v1, %v1597_v1 }
  0xc0   : > { %v921_v59 = vmul.bf16 %v865_v53, %v1664_v27  ;;  %v879_v60 = vrot.slane %v874_v46, %v1613_v30  ;;  %v888_v61 = vpack.i.b16 %v669_v54, %v669_v54 }
  0xc1   : > { %947 = vmatpush1.bf16.msra.mxu0 %v908_v6  ;;  %v920_v62 = vmul.bf16 %v858_v56, %v1662_v26  ;;  %v872_v63 = vrot.slane %v867_v57, %v1613_v30  ;;  %v881_v31 = vpack.i.b16 %v665_v58, %v665_v58 }
  0xc2   : > { %948 = vmatprep.subr.bf16.mxu0 %v911_v10  ;;  %v923_v0 = vmul.bf16 %v879_v60, %v1664_v27  ;;  %v893_v2 = vrot.slane %v888_v61, %v1613_v30 }
  0xc3   : > { %v922_v3 = vmul.bf16 %v872_v63, %v1662_v26  ;;  %v886_v4 = vrot.slane %v881_v31, %v1613_v30 }
  0xc4   : > { %v925_v5 = vmul.bf16 %v893_v2, %v1664_v27 }
  0xc5   : > { %949 = vmatpush1.bf16.msra.mxu0 %v910_v14  ;;  %v924_v6 = vmul.bf16 %v886_v4, %v1662_v26 }
  0xc6   : > { %950 = vmatprep.subr.bf16.mxu0 %v913_v20 }
  0xc9   : > { %951 = vmatpush1.bf16.msra.mxu0 %v912_v28 }
  0xca   : > { %952 = vmatprep.subr.bf16.mxu0 %v915_v29 }
  0xcd   : > { %953 = vmatpush1.bf16.msra.mxu0 %v914_v39 }
  0xce   : > { %954 = vmatprep.subr.bf16.mxu0 %v917_v43 }
  0xd1   : > { %955 = vmatpush1.bf16.msra.mxu0 %v916_v48 }
  0xd2   : > { %956 = vmatprep.subr.bf16.mxu0 %v919_v52 }
  0xd5   : > { %957 = vmatpush1.bf16.msra.mxu0 %v918_v55 }
  0xd6   : > { %958 = vmatprep.subr.bf16.mxu0 %v921_v59 }
  0xd9   : > { %959 = vmatpush1.bf16.msra.mxu0 %v920_v62 }
  0xda   : > { %960 = vmatprep.subr.bf16.mxu0 %v923_v0 }
  0xdd   : > { %961 = vmatpush1.bf16.msra.mxu0 %v922_v3 }
  0xde   : > { %962 = vmatprep.subr.bf16.mxu0 %v925_v5 }
  0xe1   : > { %963 = vmatpush1.bf16.msra.mxu0 %v924_v6 }
  0xe4   : > { %965 = vmatmul.mubr.bf16.vlgmr.msra.gmra.mrb[0].mxu0 %v930_v7 }
 0x1b7   : > { %v966_v8 = vpop.f32.mrb[0].mxu0 }
 0x1b8   : > { %v968_v9 = vpop.f32.mrb[1].mxu0 }
 0x1b9   : > { %v975_v10 = vcombine.low %v966_v8, %v968_v9  ;;  %v970_v11 = vpop.f32.mrb[2].mxu0 }
 0x1ba   : > { %v971_v12 = vpop.f32.mrb[3].mxu0 }
 0x1bb   : > { %977 = vst [vmem:[%s1593_s8] sm:$0xff] %v975_v10 }
 0x1bc PF: > { %s1152_s24 = sshll.u32 %s1382_s18, 7  ;;  %s995_s22 = sshll.u32 %s1593_s8, 4  ;;  %s996_s22 = int_to_ptr.vmem [resolvable:$true] %s995_s22 }
 0x1bd   : > { %s1772_s21 = scalar_lea.hbm %s1820_s4, %s1152_s24  ;;  %s979_s29 = scalar_lea.sflag [#allocation4], %s1584_s28 }
 0x1be   : > { %s1300_s23 = scalar_lea.vmem %s996_s22, 128  ;;  %s1396_s10 = smov [#allocation9]  }
 0x1bf   : > { %p1301_p6 = scmp.ne.s32.totalorder %s996_s22, %s1300_s23  ;;  %s1304_s30 = sshll.u32 %s1396_s10, 4  ;;  %s1305_s30 = int_to_ptr.vmem [resolvable:$false] %s1304_s30 }
 0x1c0   : > { %s1306_s25 = scalar_lea.vmem %s1305_s30, 256  ;;  %p1307_p11 = scmp.lt.s32.totalorder %s996_s22, %s1305_s30 }
 0x1c1   : > { %p1302_p9 = pnand %p1301_p6, %p1527_p8  ;;  %p1308_p5 = scmp.lt.s32.totalorder %s1306_s25, %s1300_s23 }
 0x1c3   : > { %p1303_p0 = pneg %p1302_p9  ;;  %p1309_p10 = por %p1308_p5, %p1307_p11 }
 0x1c5   : > { %p1310_p13 = pnand %p1309_p10, %p1303_p0 }
 0x1c7   : > { %1313 = shalt.err (!%p1310_p13)
}
 0x1c8   : > { %s1314_s18 = scalar_lea.hbm %s1772_s21, 128  ;;  %s1318_s7 = scalar_lea.hbm %s1820_s4, 256 }
 0x1c9   : > { %p1315_p3 = scmp.ne.s32.totalorder %s1772_s21, %s1314_s18  ;;  %p1319_p2 = scmp.lt.u32.totalorder %s1772_s21, %s1820_s4 }
 0x1ca   : > { %p1320_p1 = scmp.lt.u32.totalorder %s1318_s7, %s1314_s18  ;;  %p1322_p6 = scmp.lt.u32.totalorder %s1314_s18, %s1772_s21 }
 0x1cb   : > { %p1316_p7 = pnand %p1315_p3, %p1527_p8 }
 0x1cc   : > { %p1321_p4 = por %p1320_p1, %p1319_p2 }
 0x1cd   : > { %p1317_p12 = pneg %p1316_p7 }
 0x1ce   : > { %p1323_p9 = por %p1322_p6, %p1321_p4 }
 0x1d0   : > { %p1324_p0 = pnand %p1323_p9, %p1317_p12 }
 0x1d2   : > { %1327 = shalt.err (!%p1324_p0)
}
 0x1d3   : > { %1167 = dma.vmem_to_hbm [thread:$0]  (%p1527_p8), %s996_s22, 128, %s1772_s21, %s979_s29  }
 0x1d4 PF: > { %s1007_s14 = sand.u32 1, %s1370_s15   ;;  %p1837_p11 = scmp.ne.s32.totalorder %s1828_s26, 0 }
 0x1d5   : > { %p1838_p5 = scmp.ge.s32.totalorder %s1390_s20, 2  ;;  %s1008_s24 = scalar_lea.sflag [#allocation4], %s1007_s14 }
 0x1d7   : > { %p1181_p10 = pnand %p1838_p5, %p1837_p11 }
 0x1d9   : > { %1365 = dma.done.wait (!%p1181_p10), %s1008_s24, 128  }
 0x1da   : > { %1367 = vsyncadd (!%p1181_p10), %s1008_s24, 4294967168  ;;  %s22_s20 = sadd.s32 1, %s1390_s20   ;;  %s1839_s15 = smov %s1374_s16 }
 0x1db   : > { %p19_p13 = scmp.ge.s32.totalorder %s22_s20, 4   ;;  %s1840_s16 = smov %s1378_s17 }
 0x1dc   : > { %s1841_s17 = smov %s1533_s11  ;;  %s1842_s18 = smov %s1386_s19 }
 0x1dd   : > { %s1843_s19 = smov %s1845_s6  ;;  %21 = sbr.rel (!%p19_p13) target bundleno = 8 (0x8), region = 104 }
 0x1e4   :  { %1013 = vsyncpa [#allocation3], 1 }
 0x1e5   :  { %1015 = vsyncpa [#allocation3 + $0x1], 1 }
 0x1e6   :  { %1016 = vsyncpa [#allocation4], 1 }
 0x1e7   :  { %1018 = vsyncpa [#allocation4 + $0x1], 1 }
 0x1e8   :  { %1019 = vsyncpa [#allocation5], 1 }
 0x1e9   :  { %1021 = vsyncpa [#allocation5 + $0x1], 1 }
 0x1ea   :  { %1022 = vsyncpa [#allocation6], 1 }
 0x1eb   :  { %1024 = vsyncpa [#allocation6 + $0x1], 1 }

</bundles_post_ra>
